<compile_context>
chip_gen: v6e
topology: v6e:2x2x1
jax: 0.10.0
libtpu: 0.0.40
codegen_flags: <defaults>
</compile_context>

<pallas_src>
import functools

import jax
import jax.numpy as jnp
import numpy as np
from jax import lax
from jax.experimental import pallas as pl
from jax.experimental.pallas import tpu as pltpu

_NORMALIZE_EPS = 1e-12   # torch F.normalize default eps
_PDIST_EPS = 1e-6        # torch F.pairwise_distance default eps


def _round_up(x, m):
    return ((x + m - 1) // m) * m


def _round_down(x, m):
    return max(m, (x // m) * m)


def _contrastive_kernel(o1_ref, o2_ref, lbl_ref, out_ref, *, margin, batch,
                        block_rows):
    o1 = o1_ref[...].astype(jnp.float32)          # (TB, D)
    o2 = o2_ref[...].astype(jnp.float32)          # (TB, D)
    lbl = lbl_ref[...].astype(jnp.float32)        # (TB, 1)

    # L2-normalize each row (F.normalize, p=2, dim=1).
    # rsqrt (EUP slot) + multiply instead of sqrt + divide.
    s1 = jnp.sum(o1 * o1, axis=1, keepdims=True)
    s2 = jnp.sum(o2 * o2, axis=1, keepdims=True)
    eps2 = jnp.float32(_NORMALIZE_EPS * _NORMALIZE_EPS)
    o1n = o1 * lax.rsqrt(jnp.maximum(s1, eps2))
    o2n = o2 * lax.rsqrt(jnp.maximum(s2, eps2))

    # pairwise_distance: ||o1n - o2n + eps||_2 along dim=1
    diff = o1n - o2n + jnp.float32(_PDIST_EPS)
    d2 = jnp.sum(diff * diff, axis=1, keepdims=True)   # (TB, 1) = distance^2
    dist = jnp.sqrt(d2)

    # contrastive loss terms (label * d^2 uses d2 directly; hinge needs d)
    hinge = jnp.maximum(jnp.float32(margin) - dist, 0.0)
    loss = lbl * d2 + (1.0 - lbl) * hinge * hinge       # (TB, 1)

    # Mask rows that are batch padding (only the last block can have them).
    row = (pl.program_id(0) * block_rows
           + lax.broadcasted_iota(jnp.int32, loss.shape, 0))
    loss = jnp.where(row < batch, loss, 0.0)

    # Per-block partial sum -> (1, 1, 1) block of the (num_blocks, 1, 1) output.
    out_ref[...] = jnp.sum(loss, axis=0, keepdims=True).reshape(1, 1, 1)


def contrastive_loss_normalized(output1, output2, label, margin=1.0,
                                block_rows=None):
    """Pallas wrapper.

    output1 / output2: (B, D) float (f32 or bf16); label: (B,) float {0,1}.
    """
    B, D = output1.shape
    itemsize = jnp.dtype(output1.dtype).itemsize
    row_align = 8 if itemsize >= 4 else 16

    if block_rows is None:
        # Keep each (TB, D) input buffer <= ~4 MiB so that
        # 2 inputs x 2 pipeline buffers stay well inside the 32 MiB scoped
        # VMEM default (v7x), while staying in the 512-1024 row sweet spot.
        budget_rows = _round_down((4 * 1024 * 1024) // max(1, D * itemsize),
                                  row_align)
        block_rows = min(_round_up(B, row_align), min(budget_rows, 1024))
    block_rows = _round_up(block_rows, row_align)

    B_pad = _round_up(B, block_rows)
    num_blocks = B_pad // block_rows
    pad = B_pad - B

    o1 = output1
    o2 = output2
    lbl = label.reshape(B, 1).astype(jnp.float32)
    if pad:
        o1 = jnp.pad(o1, ((0, pad), (0, 0)))
        o2 = jnp.pad(o2, ((0, pad), (0, 0)))
        lbl = jnp.pad(lbl, ((0, pad), (0, 0)))

    kernel = functools.partial(_contrastive_kernel, margin=float(margin),
                               batch=B, block_rows=block_rows)

    partials = pl.pallas_call(
        kernel,
        out_shape=jax.ShapeDtypeStruct((num_blocks, 1, 1), jnp.float32),
        grid=(num_blocks,),
        in_specs=[
            pl.BlockSpec((block_rows, D), lambda i: (i, 0)),
            pl.BlockSpec((block_rows, D), lambda i: (i, 0)),
            pl.BlockSpec((block_rows, 1), lambda i: (i, 0)),
        ],
        out_specs=pl.BlockSpec((1, 1, 1), lambda i: (i, 0, 0)),
        compiler_params=pltpu.CompilerParams(
            dimension_semantics=("parallel",),
            vmem_limit_bytes=64 * 1024 * 1024,
        ),
    )(o1, o2, lbl)

    # Tiny final reduce + mean in plain JAX (keeps the grid axis 'parallel').
    return jnp.sum(partials) / jnp.float32(B)


def _reference(output1, output2, label, margin=1.0):
    """Pure-JAX reference mirroring the PyTorch module."""
    o1 = output1 / jnp.maximum(
        jnp.linalg.norm(output1, axis=1, keepdims=True), _NORMALIZE_EPS)
    o2 = output2 / jnp.maximum(
        jnp.linalg.norm(output2, axis=1, keepdims=True), _NORMALIZE_EPS)
    d = jnp.sqrt(jnp.sum(jnp.square(o1 - o2 + _PDIST_EPS), axis=1))
    loss = label * d ** 2 + (1.0 - label) * jnp.maximum(margin - d, 0.0) ** 2
    return jnp.mean(loss)


if __name__ == "__main__":
    key = jax.random.PRNGKey(0)
    k1, k2, k3, k4, k5, k6 = jax.random.split(key, 6)

    # Primary small case consistent with the module's forward.
    B, D = 8, 32
    output1 = jax.random.normal(k1, (B, D), dtype=jnp.float32)
    output2 = jax.random.normal(k2, (B, D), dtype=jnp.float32)
    label = jax.random.bernoulli(k3, 0.5, (B,)).astype(jnp.float32)

    loss = contrastive_loss_normalized(output1, output2, label, margin=1.0)
    jax.block_until_ready(loss)
    ref = _reference(output1, output2, label, margin=1.0)
    assert np.allclose(np.asarray(loss), np.asarray(ref), rtol=1e-5,
                       atol=1e-5), (loss, ref)

    # Ragged-batch case (exercises row padding + in-kernel masking).
    B2, D2 = 13, 32
    o1b = jax.random.normal(k4, (B2, D2), dtype=jnp.float32)
    o2b = jax.random.normal(k5, (B2, D2), dtype=jnp.float32)
    lb = jax.random.bernoulli(k6, 0.5, (B2,)).astype(jnp.float32)

    loss2 = contrastive_loss_normalized(o1b, o2b, lb, margin=0.75)
    jax.block_until_ready(loss2)
    ref2 = _reference(o1b, o2b, lb, margin=0.75)
    assert np.allclose(np.asarray(loss2), np.asarray(ref2), rtol=1e-5,
                       atol=1e-5), (loss2, ref2)

    print("KERNEL_OK")
</pallas_src>

<mosaic_0001>
module attributes {stable_mosaic.version = 11 : i64} {
  func.func @_contrastive_kernel(%arg0: i32, %arg1: memref<8x32xf32, #tpu.memory_space<vmem>>, %arg2: memref<8x32xf32, #tpu.memory_space<vmem>>, %arg3: memref<8x1xf32, #tpu.memory_space<vmem>>, %arg4: memref<1x1x1xf32, #tpu.memory_space<vmem>>) attributes {dimension_semantics = [#tpu.dimension_semantics<parallel>], iteration_bounds = array<i64: 1>, scalar_prefetch = 0 : i64, scratch_operands = 0 : i64, tpu.core_type = #tpu.core_type<tc>, window_params = [{transform_indices = @transform_0, window_bounds = array<i64: 8, 32>}, {transform_indices = @transform_1, window_bounds = array<i64: 8, 32>}, {transform_indices = @transform_2, window_bounds = array<i64: 8, 1>}, {transform_indices = @transform_3, window_bounds = array<i64: 1, 1, 1>}]} {
    %c0 = arith.constant 0 : index
    %c0_0 = arith.constant 0 : index
    %0 = vector.load %arg1[%c0, %c0_0] : memref<8x32xf32, #tpu.memory_space<vmem>>, vector<8x32xf32>
    %c0_1 = arith.constant 0 : index
    %c0_2 = arith.constant 0 : index
    %1 = vector.load %arg2[%c0_1, %c0_2] : memref<8x32xf32, #tpu.memory_space<vmem>>, vector<8x32xf32>
    %c0_3 = arith.constant 0 : index
    %c0_4 = arith.constant 0 : index
    %2 = vector.load %arg3[%c0_3, %c0_4] : memref<8x1xf32, #tpu.memory_space<vmem>>, vector<8x1xf32>
    %3 = arith.mulf %0, %0 : vector<8x32xf32>
    %cst = arith.constant dense<0.000000e+00> : vector<8xf32>
    %4 = vector.multi_reduction <add>, %3, %cst [1] : vector<8x32xf32> to vector<8xf32>
    %5 = vector.shape_cast %4 : vector<8xf32> to vector<8x1xf32>
    %6 = arith.mulf %1, %1 : vector<8x32xf32>
    %cst_5 = arith.constant dense<0.000000e+00> : vector<8xf32>
    %7 = vector.multi_reduction <add>, %6, %cst_5 [1] : vector<8x32xf32> to vector<8xf32>
    %8 = vector.shape_cast %7 : vector<8xf32> to vector<8x1xf32>
    %cst_6 = arith.constant 1.000000e-24 : f32
    %9 = vector.broadcast %cst_6 : f32 to vector<8x1xf32>
    %10 = arith.maximumf %5, %9 : vector<8x1xf32>
    %11 = math.rsqrt %10 : vector<8x1xf32>
    %12 = vector.broadcast %11 : vector<8x1xf32> to vector<8x32xf32>
    %13 = arith.mulf %0, %12 : vector<8x32xf32>
    %cst_7 = arith.constant 1.000000e-24 : f32
    %14 = vector.broadcast %cst_7 : f32 to vector<8x1xf32>
    %15 = arith.maximumf %8, %14 : vector<8x1xf32>
    %16 = math.rsqrt %15 : vector<8x1xf32>
    %17 = vector.broadcast %16 : vector<8x1xf32> to vector<8x32xf32>
    %18 = arith.mulf %1, %17 : vector<8x32xf32>
    %19 = arith.subf %13, %18 : vector<8x32xf32>
    %cst_8 = arith.constant 9.99999997E-7 : f32
    %20 = vector.broadcast %cst_8 : f32 to vector<8x32xf32>
    %21 = arith.addf %19, %20 : vector<8x32xf32>
    %22 = arith.mulf %21, %21 : vector<8x32xf32>
    %cst_9 = arith.constant dense<0.000000e+00> : vector<8xf32>
    %23 = vector.multi_reduction <add>, %22, %cst_9 [1] : vector<8x32xf32> to vector<8xf32>
    %24 = vector.shape_cast %23 : vector<8xf32> to vector<8x1xf32>
    %25 = math.sqrt %24 : vector<8x1xf32>
    %cst_10 = arith.constant 1.000000e+00 : f32
    %26 = vector.broadcast %cst_10 : f32 to vector<8x1xf32>
    %27 = arith.subf %26, %25 : vector<8x1xf32>
    %cst_11 = arith.constant 0.000000e+00 : f32
    %28 = vector.broadcast %cst_11 : f32 to vector<8x1xf32>
    %29 = arith.maximumf %27, %28 : vector<8x1xf32>
    %30 = arith.mulf %2, %24 : vector<8x1xf32>
    %cst_12 = arith.constant 1.000000e+00 : f32
    %31 = vector.broadcast %cst_12 : f32 to vector<8x1xf32>
    %32 = arith.subf %31, %2 : vector<8x1xf32>
    %33 = arith.mulf %32, %29 : vector<8x1xf32>
    %34 = arith.mulf %33, %29 : vector<8x1xf32>
    %35 = arith.addf %30, %34 : vector<8x1xf32>
    %c8_i32 = arith.constant 8 : i32
    %36 = arith.muli %arg0, %c8_i32 : i32
    %37 = tpu.iota {dimensions = array<i32: 0>} : vector<8x1xi32>
    %38 = vector.broadcast %36 : i32 to vector<8x1xi32>
    %39 = arith.addi %38, %37 : vector<8x1xi32>
    %c8_i32_13 = arith.constant 8 : i32
    %40 = vector.broadcast %c8_i32_13 : i32 to vector<8x1xi32>
    %41 = arith.cmpi slt, %39, %40 : vector<8x1xi32>
    %cst_14 = arith.constant 0.000000e+00 : f32
    %42 = vector.broadcast %cst_14 : f32 to vector<8x1xf32>
    %43 = arith.select %41, %35, %42 : vector<8x1xi1>, vector<8x1xf32>
    %cst_15 = arith.constant dense<0.000000e+00> : vector<1xf32>
    %44 = vector.multi_reduction <add>, %43, %cst_15 [0] : vector<8x1xf32> to vector<1xf32>
    %45 = vector.shape_cast %44 : vector<1xf32> to vector<1x1xf32>
    %46 = vector.shape_cast %45 : vector<1x1xf32> to vector<1x1x1xf32>
    %c0_16 = arith.constant 0 : index
    %c0_17 = arith.constant 0 : index
    %c0_18 = arith.constant 0 : index
    %47 = vector.load %arg4[%c0_16, %c0_17, %c0_18] : memref<1x1x1xf32, #tpu.memory_space<vmem>>, vector<1x1x1xf32>
    tpu.vector_store %arg4[%c0_16, %c0_17, %c0_18], %46 {strides = array<i32>} : memref<1x1x1xf32, #tpu.memory_space<vmem>>, vector<1x1x1xf32>,
    return
  }
  func.func @transform_0(%arg0: i32) -> (i32, i32) {
    %c0_i32 = arith.constant 0 : i32
    %c0_i32_0 = arith.constant 0 : i32
    return %arg0, %c0_i32 : i32, i32
  }
  func.func @transform_1(%arg0: i32) -> (i32, i32) {
    %c0_i32 = arith.constant 0 : i32
    %c0_i32_0 = arith.constant 0 : i32
    return %arg0, %c0_i32 : i32, i32
  }
  func.func @transform_2(%arg0: i32) -> (i32, i32) {
    %c0_i32 = arith.constant 0 : i32
    %c0_i32_0 = arith.constant 0 : i32
    return %arg0, %c0_i32 : i32, i32
  }
  func.func @transform_3(%arg0: i32) -> (i32, i32, i32) {
    %c0_i32 = arith.constant 0 : i32
    %c0_i32_0 = arith.constant 0 : i32
    %c0_i32_1 = arith.constant 0 : i32
    return %arg0, %c0_i32, %c0_i32_0 : i32, i32, i32
  }
}

</mosaic_0001>

<bundles_post_ra>
// kernel: tpu_custom_call.1
= control target key start
LH: loop header
LB: loop body
LE: loop exit
PB: predicated region body
PF: predicated region fallthrough
CT: control target
= control target key end

     0   :  { %8 = vsyncpa [#allocation3], 0  ;;  %s186_s0 = inlined_call_operand.vmem [shape: f32[8,32], index: 0, kind: input, shape index: {}]   ;;  %s187_s1 = inlined_call_operand.hbm [shape: f32[8,32], index: 1, kind: input, shape index: {}]   ;;  %s188_s2 = inlined_call_operand.vmem [shape: f32[8,1], index: 2, kind: input, shape index: {}]   ;;  %s189_s3 = inlined_call_operand.hbm [shape: f32[1,1,1], index: 3, kind: output, shape index: {}]  }
   0x1   :  { %9 = vsyncpa [#allocation4], 0  ;;  %s149_s12 = smov [#allocation2]  }
   0x2   :  { %s18_s13 = sshll.u32 %s149_s12, 4  ;;  %s19_s13 = int_to_ptr.vmem [resolvable:$true] %s18_s13 }
   0x3   :  { %s113_s14 = scalar_lea.vmem %s19_s13, 128  ;;  %p118_p1 = scmp.lt.s32.totalorder %s19_s13, %s19_s13 }
   0x4   :  { %p114_p0 = scmp.ne.s32.totalorder %s19_s13, %s113_s14  ;;  %p119_p2 = scmp.lt.s32.totalorder %s113_s14, %s113_s14 }
   0x6   :  { %p120_p3 = por %p119_p2, %p118_p1 }
   0x8   :  { %p121_p4 = pnand %p120_p3, %p114_p0 }
   0xa   :  { %124 = shalt.err (!%p121_p4)
}
   0xb   :  { %21 = dma.hbm_to_vmem [thread:$0]  %s187_s1, 128, %s19_s13, [#allocation3]  }
   0xc   :  { %145 = dma.done.wait [#allocation3], 128  }
   0xd   :  { %146 = vsyncadd [#allocation3], 4294967168  ;;  %v27_v0 = vld [vmem:[%s186_s0] sm:$0xff]  ;;  %vm31_vm0 = vcmask 261120   ;;  %vm72_vm3 = vcmask 7168   ;;  %s150_s19 = smov [#allocation5]  }
   0xe   :  { %v28_v1 = vld [vmem:[#allocation2] sm:$0xff]  ;;  %v30_v2 = vmul.f32 %v27_v0, %v27_v0  ;;  %s88_s20 = sshll.u32 %s150_s19, 4  ;;  %vm80_vm4 = vcmask 0   ;;  %s89_s20 = int_to_ptr.vmem [resolvable:$true] %s88_s20 }
   0xf   :  { %v35_v3 = vmul.f32 %v28_v1, %v28_v1  ;;  %v29_v23 = vld [vmem:[%s188_s2] sm:$0xff]  ;;  %s125_s2 = scalar_lea.vmem %s89_s20, 16  ;;  %s129_s21 = scalar_lea.vmem %s89_s20, 32 }
  0x10   :  { %v32_v4 = vsel %vm31_vm0, %v30_v2, 0.0  ;;  %v61_v25 = vsub.f32 1.0, %v29_v23  ;;  %p126_p5 = scmp.ne.s32.totalorder %s89_s20, %s125_s2  ;;  %p130_p6 = scmp.lt.s32.totalorder %s89_s20, %s89_s20 }
  0x11   :  { %33 = vadd.xlane.f32.xlu0 %v32_v4  ;;  %v36_v5 = vsel %vm31_vm0, %v35_v3, 0.0  ;;  %p131_p7 = scmp.lt.s32.totalorder %s129_s21, %s125_s2 }
  0x13   :  { %p132_p8 = por %p131_p7, %p130_p6 }
  0x15   :  { %37 = vadd.xlane.f32.xlu0 %v36_v5  ;;  %p133_p9 = pnand %p132_p8, %p126_p5 }
  0x9a   :  { %v34_v6 = vpop.xlane.xlu0 %33 }
  0x9b   :  { %v39_v7 = vmax.f32 %v34_v6, 1e-24 }
  0x9d   :  { %99 = vrsqrt.f32 %v39_v7 }
  0x9e   :  { %v38_v8 = vpop.xlane.xlu0 %37 }
  0x9f   :  { %v42_v9 = vmax.f32 %v38_v8, 1e-24 }
  0xa1   :  { %101 = vrsqrt.f32 %v42_v9 }
  0xaa   :  { %v100_v10 = vpop.eup %99 }
  0xab   :  { %v41_v12 = vmul.f32 %v100_v10, %v27_v0 }
  0xae   :  { %v102_v11 = vpop.eup %101 }
  0xaf   :  { %v44_v13 = vmul.f32 %v102_v11, %v28_v1 }
  0xb1   :  { %v45_v14 = vsub.f32 %v41_v12, %v44_v13 }
  0xb3   :  { %v46_v15 = vadd.f32 1e-06, %v45_v14 }
  0xb5   :  { %v47_v16 = vmul.f32 %v46_v15, %v46_v15 }
  0xb7   :  { %v48_v17 = vsel %vm31_vm0, %v47_v16, 0.0 }
  0xb8   :  { %49 = vadd.xlane.f32.xlu1 %v48_v17 }
 0x141   :  { %v50_v18 = vpop.xlane.xlu1 %49 }
 0x142   :  { %103 = vrsqrt.f32 %v50_v18  ;;  %vm53_vm1 = vcmp.eq.f32.partialorder %v50_v18, inf  ;;  %v56_v21 = vand.u32 2147483648, %v50_v18  ;;  %vm55_vm2 = vcmp.eq.f32.partialorder %v50_v18, 0.0 }
 0x143   :  { %v60_v29 = vmul.f32 %v50_v18, %v29_v23 }
 0x14f   :  { %v104_v19 = vpop.eup %103 }
 0x150   :  { %v52_v20 = vmul.f32 %v104_v19, %v50_v18 }
 0x152   :  { %v54_v22 = vsel %vm53_vm1, %v50_v18, %v52_v20 }
 0x153   :  { %v57_v24 = vsel %vm55_vm2, %v56_v21, %v54_v22 }
 0x154   :  { %v58_v26 = vsub.f32 1.0, %v57_v24 }
 0x156   :  { %v59_v27 = vmax.f32 %v58_v26, 0.0 }
 0x158   :  { %v62_v28 = vmul.f32 %v61_v25, %v59_v27 }
 0x15a   :  { %v63_v30 = vmul.f32 %v62_v28, %v59_v27 }
 0x15c   :  { %v64_v31 = vadd.f32 %v63_v30, %v60_v29 }
 0x15e   :  { %v73_v32 = vsel %vm72_vm3, %v64_v31, 0.0 }
 0x15f   :  { %v74_v33 = vrot.slane %v73_v32, 4 }
 0x161   :  { %v75_v34 = vadd.f32 %v74_v33, %v73_v32 }
 0x163   :  { %v76_v35 = vrot.slane %v75_v34, 2 }
 0x165   :  { %v77_v36 = vadd.f32 %v76_v35, %v75_v34 }
 0x167   :  { %v78_v37 = vrot.slane %v77_v36, 1 }
 0x169   :  { %v79_v38 = vadd.f32 %v78_v37, %v77_v36 }
 0x16b   :  { %81 = vst.msk [vmem:[#allocation5] sm:$0x1] %vm80_vm4, %v79_v38 }
 0x16c   :  { %136 = shalt.err (!%p133_p9)
}
 0x16d   :  { %91 = dma.vmem_to_hbm [thread:$0]  %s89_s20, 16, %s189_s3, [#allocation4]  }
 0x16e   :  { %147 = dma.done.wait [#allocation4], 16  }
 0x16f   :  { %148 = vsyncadd [#allocation4], 4294967280 }
 0x170   :  { %95 = vsyncpa [#allocation3], 1 }
 0x171   :  { %96 = vsyncpa [#allocation4], 1 }

</bundles_post_ra>
